<compile_context>
chip_gen: v7x
topology: tpu7x:2x2x1
jax: 0.10.0
libtpu: 0.0.40
codegen_flags: <defaults>
</compile_context>

<pallas_src>
import jax
import jax.numpy as jnp
from jax import lax
from jax.experimental import pallas as pl
from jax.experimental.pallas import tpu as pltpu

# ----- small synthetic config (shapes implied by a BERT encoder layer) -------
B, S, H = 2, 8, 32          # batch, seq, hidden_size
NUM_HEADS = 4
HEAD_DIM = H // NUM_HEADS
INTER = 4 * H               # intermediate_size
VOCAB = 64                  # vocab_size for the final fc
NUM_LAYERS = 2              # num_hidden_layers
LN_EPS = 1e-12              # BERT layer_norm_eps

BATCH_SPLITS = 2            # "parallel" grid axis (feeds both TCs on v7x)
assert B % BATCH_SPLITS == 0
B_STEP = B // BATCH_SPLITS
BS = B * S                              # total rows
BS_STEP = B_STEP * S                    # rows per grid step
NBS_STEP = NUM_HEADS * BS_STEP          # packed-head rows per grid step
VOCAB_PAD = 128                         # lane-dense output slab
BIAS_LANES = 128                        # width of each bias-bundle row
assert 3 * H <= BIAS_LANES and INTER <= BIAS_LANES and H <= BIAS_LANES

# rows of the per-layer (8, BIAS_LANES) f32 bias / LayerNorm bundle
ROW_BQKV, ROW_BI, ROW_BO, ROW_G1, ROW_B1, ROW_BO2, ROW_G2, ROW_B2 = range(8)


# ----------------------------- in-kernel math --------------------------------
def _gelu(x):
    # TODO(synk): HF BERT default activation is exact-erf GELU; the tanh
    # approximation is used since erf has no guaranteed Mosaic lowering.
    c = 0.7978845608028654  # sqrt(2/pi)
    return 0.5 * x * (1.0 + jnp.tanh(c * (x + 0.044715 * x * x * x)))


def _layernorm(x, g, b):
    mu = jnp.mean(x, axis=-1, keepdims=True)
    xc = x - mu
    var = jnp.mean(xc * xc, axis=-1, keepdims=True)
    return xc * lax.rsqrt(var + LN_EPS) * g + b


def _bf(x):
    return x.astype(jnp.bfloat16)


# --------------------------------- kernel ------------------------------------
# One BERT encoder layer per grid step; fc projection at the last layer.
def model_kernel(x_ref, mask_ref, wqkv_ref, wo_ref, wi_ref, wo2_ref,
                 bias_ref, fcw_ref, fcb_ref, out_ref, h_ref):
    layer = pl.program_id(1)

    @pl.when(layer == 0)
    def _():
        h_ref[...] = x_ref[...]                      # load this split's rows

    h = h_ref[...]                                   # (BS_STEP, H) f32
    bias = bias_ref[...]                             # (8, BIAS_LANES) f32

    # Fused, head-permuted QKV projection: one (BS_STEP, H) @ (H, 3H) matmul.
    qkv = (jnp.dot(_bf(h), wqkv_ref[...], preferred_element_type=jnp.float32)
           + bias[ROW_BQKV:ROW_BQKV + 1, :3 * H])

    # Pack heads along sublanes.  Weight columns were permuted at pack time so
    # each head's [q | k | v] columns are contiguous: 4 lane slices + 1 concat.
    # TODO(synk): a single (BS, H)->(NBS, HEAD_DIM) reshape / pltpu.einshape
    # would drop these shuffles entirely, but minor-dim reshapes have no
    # guaranteed Mosaic lowering at these shapes, so slice+concat is kept.
    qkv_p = jnp.concatenate(
        [qkv[:, hh * 3 * HEAD_DIM:(hh + 1) * 3 * HEAD_DIM]
         for hh in range(NUM_HEADS)], axis=0)        # (NBS_STEP, 3*HEAD_DIM)
    q = qkv_p[:, 0:HEAD_DIM]
    k = qkv_p[:, HEAD_DIM:2 * HEAD_DIM]
    v = qkv_p[:, 2 * HEAD_DIM:3 * HEAD_DIM]

    # One QK^T and one P@V matmul for all heads of this batch split.
    # 1/sqrt(head_dim) folded into Q weights/bias at pack time; block mask is
    # precomputed f32, additive, applied after the f32 accumulation.
    s = lax.dot_general(_bf(q), _bf(k), (((1,), (1,)), ((), ())),
                        preferred_element_type=jnp.float32)
    s = s + mask_ref[...]
    s = s - jnp.max(s, axis=-1, keepdims=True)
    p = jnp.exp(s)
    p = p * pl.reciprocal(jnp.sum(p, axis=-1, keepdims=True), approx=True)

    ctx = jnp.dot(_bf(p), _bf(v), preferred_element_type=jnp.float32)
    ctx = jnp.concatenate(
        [ctx[hh * BS_STEP:(hh + 1) * BS_STEP, :] for hh in range(NUM_HEADS)],
        axis=-1)                                     # (BS_STEP, H)

    attn = (jnp.dot(_bf(ctx), wo_ref[...], preferred_element_type=jnp.float32)
            + bias[ROW_BO:ROW_BO + 1, :H])
    h1 = _layernorm(attn + h, bias[ROW_G1:ROW_G1 + 1, :H],
                    bias[ROW_B1:ROW_B1 + 1, :H])

    inter = _gelu(jnp.dot(_bf(h1), wi_ref[...],
                          preferred_element_type=jnp.float32)
                  + bias[ROW_BI:ROW_BI + 1, :INTER])
    ffn = (jnp.dot(_bf(inter), wo2_ref[...], preferred_element_type=jnp.float32)
           + bias[ROW_BO2:ROW_BO2 + 1, :H])
    h_new = _layernorm(ffn + h1, bias[ROW_G2:ROW_G2 + 1, :H],
                       bias[ROW_B2:ROW_B2 + 1, :H])
    h_ref[...] = h_new

    # Final nn.Linear(hidden -> vocab), lane-dense (padded to 128) output.
    @pl.when(layer == NUM_LAYERS - 1)
    def _():
        out_ref[...] = (jnp.dot(_bf(h_new), fcw_ref[...],
                                preferred_element_type=jnp.float32)
                        + fcb_ref[...])


# ------------------------------ param packing --------------------------------
def _build_mask():
    """(head, local-batch) block-diagonal additive mask for one grid step."""
    blk = jnp.arange(NBS_STEP) // S          # row // S == (head, batch) block
    valid = blk[:, None] == blk[None, :]
    return jnp.where(valid, 0.0, -1e30).astype(jnp.float32)


def pack_params(params):
    """One-time ('weight-load') packing: layer-stacked bf16 MXU weights, a
    single f32 bias/LN bundle per layer, head-contiguous QKV columns with
    1/sqrt(head_dim) folded into Q, fc padded to 128 lanes, precomputed mask."""
    inv = 1.0 / (HEAD_DIM ** 0.5)
    wqkv_l, wo_l, wi_l, wo2_l, bias_l = [], [], [], [], []
    for (wq, bq, wk, bk, wv, bv, wo, bo, g1, b1,
         wi, bi, wo2, bo2, g2, b2) in params["layers"]:
        cols, bcols = [], []
        for hh in range(NUM_HEADS):
            sl = slice(hh * HEAD_DIM, (hh + 1) * HEAD_DIM)
            cols += [wq[:, sl] * inv, wk[:, sl], wv[:, sl]]
            bcols += [bq[:, sl] * inv, bk[:, sl], bv[:, sl]]
        wqkv = jnp.concatenate(cols, axis=1)             # (H, 3H), head-perm
        bqkv = jnp.concatenate(bcols, axis=1)            # (1, 3H)
        wqkv_l.append(wqkv.astype(jnp.bfloat16))
        wo_l.append(wo.astype(jnp.bfloat16))
        wi_l.append(wi.astype(jnp.bfloat16))
        wo2_l.append(wo2.astype(jnp.bfloat16))
        bb = jnp.zeros((8, BIAS_LANES), jnp.float32)
        bb = bb.at[ROW_BQKV, :3 * H].set(bqkv[0])
        bb = bb.at[ROW_BI, :INTER].set(bi[0])
        for r, vrow in ((ROW_BO, bo), (ROW_G1, g1), (ROW_B1, b1),
                        (ROW_BO2, bo2), (ROW_G2, g2), (ROW_B2, b2)):
            bb = bb.at[r, :H].set(vrow[0])
        bias_l.append(bb)

    fc_w = jnp.zeros((H, VOCAB_PAD), jnp.float32)
    fc_w = fc_w.at[:, :VOCAB].set(params["fc_w"]).astype(jnp.bfloat16)
    fc_b = jnp.zeros((1, VOCAB_PAD), jnp.float32)
    fc_b = fc_b.at[:, :VOCAB].set(params["fc_b"])
    return {
        "mask": _build_mask(),
        "wqkv": jnp.stack(wqkv_l), "wo": jnp.stack(wo_l),
        "wi": jnp.stack(wi_l), "wo2": jnp.stack(wo2_l),
        "bias": jnp.stack(bias_l),
        "fc_w": fc_w, "fc_b": fc_b,
    }


# ------------------------------ cost estimate ---------------------------------
_MM_FLOPS_PER_LAYER = (
    2 * BS * H * (3 * H)                                    # QKV
    + 2 * 2 * BATCH_SPLITS * NBS_STEP * NBS_STEP * HEAD_DIM  # QK^T + P@V
    + 2 * BS * H * H                                        # attn out proj
    + 2 * BS * H * INTER + 2 * BS * INTER * H)              # FFN
_COST = pl.CostEstimate(
    flops=NUM_LAYERS * _MM_FLOPS_PER_LAYER + 2 * BS * H * VOCAB_PAD,
    transcendentals=NUM_LAYERS * (BATCH_SPLITS * NBS_STEP * NBS_STEP
                                  + BS * INTER),
    bytes_accessed=(
        BATCH_SPLITS * NUM_LAYERS
        * (2 * (H * 3 * H + H * H + H * INTER + INTER * H) + 4 * 8 * BIAS_LANES)
        + 2 * H * VOCAB_PAD + 4 * VOCAB_PAD
        + 4 * BS * H + 4 * NBS_STEP * NBS_STEP + 4 * BS * VOCAB_PAD))


# ------------------------------ pallas wrapper --------------------------------
@jax.jit
def bert_decoder(x, packed):
    args = (x.reshape(BS, H), packed["mask"], packed["wqkv"], packed["wo"],
            packed["wi"], packed["wo2"], packed["bias"],
            packed["fc_w"], packed["fc_b"])

    in_specs = [
        pl.BlockSpec((BS_STEP, H), lambda bi, li: (bi, 0)),              # x
        pl.BlockSpec((NBS_STEP, NBS_STEP), lambda bi, li: (0, 0)),       # mask
        pl.BlockSpec((None, H, 3 * H), lambda bi, li: (li, 0, 0)),       # Wqkv
        pl.BlockSpec((None, H, H), lambda bi, li: (li, 0, 0)),           # Wo
        pl.BlockSpec((None, H, INTER), lambda bi, li: (li, 0, 0)),       # Wi
        pl.BlockSpec((None, INTER, H), lambda bi, li: (li, 0, 0)),       # Wo2
        pl.BlockSpec((None, 8, BIAS_LANES), lambda bi, li: (li, 0, 0)),  # biases
        pl.BlockSpec((H, VOCAB_PAD), lambda bi, li: (0, 0)),             # fc_w
        pl.BlockSpec((1, VOCAB_PAD), lambda bi, li: (0, 0)),             # fc_b
    ]

    y_pad = pl.pallas_call(
        model_kernel,
        out_shape=jax.ShapeDtypeStruct((BS, VOCAB_PAD), jnp.float32),
        grid_spec=pltpu.PrefetchScalarGridSpec(
            num_scalar_prefetch=0,
            grid=(BATCH_SPLITS, NUM_LAYERS),
            in_specs=in_specs,
            out_specs=pl.BlockSpec((BS_STEP, VOCAB_PAD),
                                   lambda bi, li: (bi, 0)),
            scratch_shapes=[pltpu.VMEM((BS_STEP, H), jnp.float32)],
        ),
        compiler_params=pltpu.CompilerParams(
            dimension_semantics=("parallel", "arbitrary")),
        cost_estimate=_COST,
    )(*args)
    return y_pad[:, :VOCAB].reshape(B, S, VOCAB)


# ------------------------------ param init / ref ------------------------------
def init_params(key):
    def lin(k, fan_in, fan_out):
        return 0.02 * jax.random.normal(k, (fan_in, fan_out), jnp.float32)

    layers = []
    for _ in range(NUM_LAYERS):
        key, *ks = jax.random.split(key, 7)
        layers.append((
            lin(ks[0], H, H), jnp.zeros((1, H), jnp.float32),       # Wq, bq
            lin(ks[1], H, H), jnp.zeros((1, H), jnp.float32),       # Wk, bk
            lin(ks[2], H, H), jnp.zeros((1, H), jnp.float32),       # Wv, bv
            lin(ks[3], H, H), jnp.zeros((1, H), jnp.float32),       # Wo, bo
            jnp.ones((1, H), jnp.float32), jnp.zeros((1, H), jnp.float32),  # LN1
            lin(ks[4], H, INTER), jnp.zeros((1, INTER), jnp.float32),       # Wi
            lin(ks[5], INTER, H), jnp.zeros((1, H), jnp.float32),           # Wo2
            jnp.ones((1, H), jnp.float32), jnp.zeros((1, H), jnp.float32),  # LN2
        ))
    key, kfc = jax.random.split(key)
    return {
        "layers": tuple(layers),
        "fc_w": lin(kfc, H, VOCAB),
        "fc_b": jnp.zeros((1, VOCAB), jnp.float32),
    }, key


def reference(x, params):
    def ln(v, g, b):
        mu = jnp.mean(v, axis=-1, keepdims=True)
        vc = v - mu
        var = jnp.mean(vc * vc, axis=-1, keepdims=True)
        return vc * lax.rsqrt(var + LN_EPS) * g + b

    h = x
    for (wq, bq, wk, bk, wv, bv, wo, bo, g1, b1,
         wi, bi, wo2, bo2, g2, b2) in params["layers"]:
        q = h @ wq + bq
        k = h @ wk + bk
        v = h @ wv + bv
        qh = q.reshape(B, S, NUM_HEADS, HEAD_DIM)
        kh = k.reshape(B, S, NUM_HEADS, HEAD_DIM)
        vh = v.reshape(B, S, NUM_HEADS, HEAD_DIM)
        s = jnp.einsum("bqhd,bkhd->bhqk", qh, kh) / (HEAD_DIM ** 0.5)
        p = jax.nn.softmax(s, axis=-1)
        ctx = jnp.einsum("bhqk,bkhd->bqhd", p, vh).reshape(B, S, H)
        attn = ctx @ wo + bo
        h1 = ln(attn + h, g1, b1)
        inter = _gelu(h1 @ wi + bi)
        h = ln(inter @ wo2 + bo2 + h1, g2, b2)
    return h @ params["fc_w"] + params["fc_b"]


if __name__ == "__main__":
    key = jax.random.PRNGKey(0)
    params, key = init_params(key)
    key, kx = jax.random.split(key)
    x = jax.random.normal(kx, (B, S, H), jnp.float32)

    packed = pack_params(params)          # one-time weight packing
    y = bert_decoder(x, packed)
    jax.block_until_ready(y)

    assert y.shape == (B, S, VOCAB), y.shape
    y_ref = reference(x, params)
    err = float(jnp.max(jnp.abs(y - y_ref)))
    assert err < 1e-2, err

    print("KERNEL_OK")
</pallas_src>

<mosaic_0001>
module attributes {stable_mosaic.version = 11 : i64} {
  func.func @model_kernel(%arg0: i32, %arg1: i32, %arg2: memref<8x32xf32, #tpu.memory_space<vmem>>, %arg3: memref<32x32xf32, #tpu.memory_space<vmem>>, %arg4: memref<1x32x96xbf16, #tpu.memory_space<vmem>>, %arg5: memref<1x32x32xbf16, #tpu.memory_space<vmem>>, %arg6: memref<1x32x128xbf16, #tpu.memory_space<vmem>>, %arg7: memref<1x128x32xbf16, #tpu.memory_space<vmem>>, %arg8: memref<1x8x128xf32, #tpu.memory_space<vmem>>, %arg9: memref<32x128xbf16, #tpu.memory_space<vmem>>, %arg10: memref<1x128xf32, #tpu.memory_space<vmem>>, %arg11: memref<8x128xf32, #tpu.memory_space<vmem>>, %arg12: memref<8x32xf32, #tpu.memory_space<vmem>>) attributes {dimension_semantics = [#tpu.dimension_semantics<parallel>, #tpu.dimension_semantics<arbitrary>], iteration_bounds = array<i64: 2, 2>, scalar_prefetch = 0 : i64, scratch_operands = 1 : i64, tpu.core_type = #tpu.core_type<tc>, window_params = [{transform_indices = @transform_0, window_bounds = array<i64: 8, 32>}, {pipeline_mode = #tpu.pipeline_mode<synchronous>, transform_indices = @transform_1, window_bounds = array<i64: 32, 32>}, {transform_indices = @transform_2, window_bounds = array<i64: 1, 32, 96>}, {transform_indices = @transform_3, window_bounds = array<i64: 1, 32, 32>}, {transform_indices = @transform_4, window_bounds = array<i64: 1, 32, 128>}, {transform_indices = @transform_5, window_bounds = array<i64: 1, 128, 32>}, {transform_indices = @transform_6, window_bounds = array<i64: 1, 8, 128>}, {pipeline_mode = #tpu.pipeline_mode<synchronous>, transform_indices = @transform_7, window_bounds = array<i64: 32, 128>}, {pipeline_mode = #tpu.pipeline_mode<synchronous>, transform_indices = @transform_8, window_bounds = array<i64: 1, 128>}, {transform_indices = @transform_9, window_bounds = array<i64: 8, 128>}]} {
    %c0_i32 = arith.constant 0 : i32
    %0 = arith.cmpi eq, %arg1, %c0_i32 : i32
    %1 = arith.extui %0 : i1 to i32
    %c0_i32_0 = arith.constant 0 : i32
    %2 = arith.cmpi ne, %1, %c0_i32_0 : i32
    scf.if %2 {
      %c0_43 = arith.constant 0 : index
      %c0_44 = arith.constant 0 : index
      %128 = vector.load %arg2[%c0_43, %c0_44] : memref<8x32xf32, #tpu.memory_space<vmem>>, vector<8x32xf32>
      %c0_45 = arith.constant 0 : index
      %c0_46 = arith.constant 0 : index
      %129 = vector.load %arg12[%c0_45, %c0_46] : memref<8x32xf32, #tpu.memory_space<vmem>>, vector<8x32xf32>
      tpu.vector_store %arg12[%c0_45, %c0_46], %128 {strides = array<i32>} : memref<8x32xf32, #tpu.memory_space<vmem>>, vector<8x32xf32>,
    } else {
    }
    %c0 = arith.constant 0 : index
    %c0_1 = arith.constant 0 : index
    %3 = vector.load %arg12[%c0, %c0_1] : memref<8x32xf32, #tpu.memory_space<vmem>>, vector<8x32xf32>
    %c0_2 = arith.constant 0 : index
    %c0_3 = arith.constant 0 : index
    %c0_4 = arith.constant 0 : index
    %4 = vector.load %arg8[%c0_2, %c0_3, %c0_4] : memref<1x8x128xf32, #tpu.memory_space<vmem>>, vector<1x8x128xf32>
    %5 = vector.shape_cast %4 : vector<1x8x128xf32> to vector<8x128xf32>
    %6 = arith.truncf %3 : vector<8x32xf32> to vector<8x32xbf16>
    %c0_5 = arith.constant 0 : index
    %c0_6 = arith.constant 0 : index
    %c0_7 = arith.constant 0 : index
    %7 = vector.load %arg4[%c0_5, %c0_6, %c0_7] : memref<1x32x96xbf16, #tpu.memory_space<vmem>>, vector<1x32x96xbf16>
    %8 = vector.shape_cast %7 : vector<1x32x96xbf16> to vector<32x96xbf16>
    %cst = arith.constant dense<0.000000e+00> : vector<8x96xf32>
    %9 = tpu.matmul %6, %8, %cst {dimension_numbers = #tpu.dot_dimension_numbers<[1], [0], [0], [1], [0, 0, 1, 1], [], []>} : vector<8x32xbf16>, vector<32x96xbf16>, vector<8x96xf32> -> vector<8x96xf32>
    %10 = vector.extract_strided_slice %5 {offsets = [0, 0], sizes = [1, 96], strides = [1, 1]} : vector<8x128xf32> to vector<1x96xf32>
    %11 = vector.broadcast %10 : vector<1x96xf32> to vector<8x96xf32>
    %12 = arith.addf %9, %11 : vector<8x96xf32>
    %13 = vector.extract_strided_slice %12 {offsets = [0, 0], sizes = [8, 24], strides = [1, 1]} : vector<8x96xf32> to vector<8x24xf32>
    %14 = vector.extract_strided_slice %12 {offsets = [0, 24], sizes = [8, 24], strides = [1, 1]} : vector<8x96xf32> to vector<8x24xf32>
    %15 = vector.extract_strided_slice %12 {offsets = [0, 48], sizes = [8, 24], strides = [1, 1]} : vector<8x96xf32> to vector<8x24xf32>
    %16 = vector.extract_strided_slice %12 {offsets = [0, 72], sizes = [8, 24], strides = [1, 1]} : vector<8x96xf32> to vector<8x24xf32>
    %17 = tpu.concatenate %13, %14, %15, %16 in 0 : vector<8x24xf32>, vector<8x24xf32>, vector<8x24xf32>, vector<8x24xf32> -> vector<32x24xf32>
    %18 = vector.extract_strided_slice %17 {offsets = [0, 0], sizes = [32, 8], strides = [1, 1]} : vector<32x24xf32> to vector<32x8xf32>
    %19 = vector.extract_strided_slice %17 {offsets = [0, 8], sizes = [32, 8], strides = [1, 1]} : vector<32x24xf32> to vector<32x8xf32>
    %20 = vector.extract_strided_slice %17 {offsets = [0, 16], sizes = [32, 8], strides = [1, 1]} : vector<32x24xf32> to vector<32x8xf32>
    %21 = arith.truncf %18 : vector<32x8xf32> to vector<32x8xbf16>
    %22 = arith.truncf %19 : vector<32x8xf32> to vector<32x8xbf16>
    %cst_8 = arith.constant dense<0.000000e+00> : vector<32x32xf32>
    %23 = tpu.matmul %21, %22, %cst_8 {dimension_numbers = #tpu.dot_dimension_numbers<[1], [1], [0], [0], [0, 0, 1, 0], [], []>} : vector<32x8xbf16>, vector<32x8xbf16>, vector<32x32xf32> -> vector<32x32xf32>
    %c0_9 = arith.constant 0 : index
    %c0_10 = arith.constant 0 : index
    %24 = vector.load %arg3[%c0_9, %c0_10] : memref<32x32xf32, #tpu.memory_space<vmem>>, vector<32x32xf32>
    %25 = arith.addf %23, %24 : vector<32x32xf32>
    %cst_11 = arith.constant dense<0xFF800000> : vector<32xf32>
    %26 = vector.multi_reduction <maximumf>, %25, %cst_11 [1] : vector<32x32xf32> to vector<32xf32>
    %27 = vector.shape_cast %26 : vector<32xf32> to vector<32x1xf32>
    %28 = vector.broadcast %27 : vector<32x1xf32> to vector<32x32xf32>
    %29 = arith.subf %25, %28 : vector<32x32xf32>
    %30 = math.exp %29 : vector<32x32xf32>
    %cst_12 = arith.constant dense<0.000000e+00> : vector<32xf32>
    %31 = vector.multi_reduction <add>, %30, %cst_12 [1] : vector<32x32xf32> to vector<32xf32>
    %32 = vector.shape_cast %31 : vector<32xf32> to vector<32x1xf32>
    %33 = tpu.reciprocal %32 {approx = true} : vector<32x1xf32> -> vector<32x1xf32>
    %34 = vector.broadcast %33 : vector<32x1xf32> to vector<32x32xf32>
    %35 = arith.mulf %30, %34 : vector<32x32xf32>
    %36 = arith.truncf %35 : vector<32x32xf32> to vector<32x32xbf16>
    %37 = arith.truncf %20 : vector<32x8xf32> to vector<32x8xbf16>
    %cst_13 = arith.constant dense<0.000000e+00> : vector<32x8xf32>
    %38 = tpu.matmul %36, %37, %cst_13 {dimension_numbers = #tpu.dot_dimension_numbers<[1], [0], [0], [1], [0, 0, 1, 1], [], []>} : vector<32x32xbf16>, vector<32x8xbf16>, vector<32x8xf32> -> vector<32x8xf32>
    %39 = vector.extract_strided_slice %38 {offsets = [0, 0], sizes = [8, 8], strides = [1, 1]} : vector<32x8xf32> to vector<8x8xf32>
    %40 = vector.extract_strided_slice %38 {offsets = [8, 0], sizes = [8, 8], strides = [1, 1]} : vector<32x8xf32> to vector<8x8xf32>
    %41 = vector.extract_strided_slice %38 {offsets = [16, 0], sizes = [8, 8], strides = [1, 1]} : vector<32x8xf32> to vector<8x8xf32>
    %42 = vector.extract_strided_slice %38 {offsets = [24, 0], sizes = [8, 8], strides = [1, 1]} : vector<32x8xf32> to vector<8x8xf32>
    %43 = tpu.concatenate %39, %40, %41, %42 in 1 : vector<8x8xf32>, vector<8x8xf32>, vector<8x8xf32>, vector<8x8xf32> -> vector<8x32xf32>
    %44 = arith.truncf %43 : vector<8x32xf32> to vector<8x32xbf16>
    %c0_14 = arith.constant 0 : index
    %c0_15 = arith.constant 0 : index
    %c0_16 = arith.constant 0 : index
    %45 = vector.load %arg5[%c0_14, %c0_15, %c0_16] : memref<1x32x32xbf16, #tpu.memory_space<vmem>>, vector<1x32x32xbf16>
    %46 = vector.shape_cast %45 : vector<1x32x32xbf16> to vector<32x32xbf16>
    %cst_17 = arith.constant dense<0.000000e+00> : vector<8x32xf32>
    %47 = tpu.matmul %44, %46, %cst_17 {dimension_numbers = #tpu.dot_dimension_numbers<[1], [0], [0], [1], [0, 0, 1, 1], [], []>} : vector<8x32xbf16>, vector<32x32xbf16>, vector<8x32xf32> -> vector<8x32xf32>
    %48 = vector.extract_strided_slice %5 {offsets = [2, 0], sizes = [1, 32], strides = [1, 1]} : vector<8x128xf32> to vector<1x32xf32>
    %49 = vector.broadcast %48 : vector<1x32xf32> to vector<8x32xf32>
    %50 = arith.addf %47, %49 : vector<8x32xf32>
    %51 = arith.addf %50, %3 : vector<8x32xf32>
    %52 = vector.extract_strided_slice %5 {offsets = [3, 0], sizes = [1, 32], strides = [1, 1]} : vector<8x128xf32> to vector<1x32xf32>
    %53 = vector.extract_strided_slice %5 {offsets = [4, 0], sizes = [1, 32], strides = [1, 1]} : vector<8x128xf32> to vector<1x32xf32>
    %cst_18 = arith.constant dense<0.000000e+00> : vector<8xf32>
    %54 = vector.multi_reduction <add>, %51, %cst_18 [1] : vector<8x32xf32> to vector<8xf32>
    %55 = vector.shape_cast %54 : vector<8xf32> to vector<8x1xf32>
    %cst_19 = arith.constant 3.200000e+01 : f32
    %56 = vector.broadcast %cst_19 : f32 to vector<8x1xf32>
    %57 = arith.divf %55, %56 : vector<8x1xf32>
    %58 = vector.broadcast %57 : vector<8x1xf32> to vector<8x32xf32>
    %59 = arith.subf %51, %58 : vector<8x32xf32>
    %60 = arith.mulf %59, %59 : vector<8x32xf32>
    %cst_20 = arith.constant dense<0.000000e+00> : vector<8xf32>
    %61 = vector.multi_reduction <add>, %60, %cst_20 [1] : vector<8x32xf32> to vector<8xf32>
    %62 = vector.shape_cast %61 : vector<8xf32> to vector<8x1xf32>
    %cst_21 = arith.constant 3.200000e+01 : f32
    %63 = vector.broadcast %cst_21 : f32 to vector<8x1xf32>
    %64 = arith.divf %62, %63 : vector<8x1xf32>
    %cst_22 = arith.constant 9.99999996E-13 : f32
    %65 = vector.broadcast %cst_22 : f32 to vector<8x1xf32>
    %66 = arith.addf %64, %65 : vector<8x1xf32>
    %67 = math.rsqrt %66 : vector<8x1xf32>
    %68 = vector.broadcast %67 : vector<8x1xf32> to vector<8x32xf32>
    %69 = arith.mulf %59, %68 : vector<8x32xf32>
    %70 = vector.broadcast %52 : vector<1x32xf32> to vector<8x32xf32>
    %71 = arith.mulf %69, %70 : vector<8x32xf32>
    %72 = vector.broadcast %53 : vector<1x32xf32> to vector<8x32xf32>
    %73 = arith.addf %71, %72 : vector<8x32xf32>
    %74 = arith.truncf %73 : vector<8x32xf32> to vector<8x32xbf16>
    %c0_23 = arith.constant 0 : index
    %c0_24 = arith.constant 0 : index
    %c0_25 = arith.constant 0 : index
    %75 = vector.load %arg6[%c0_23, %c0_24, %c0_25] : memref<1x32x128xbf16, #tpu.memory_space<vmem>>, vector<1x32x128xbf16>
    %76 = vector.shape_cast %75 : vector<1x32x128xbf16> to vector<32x128xbf16>
    %cst_26 = arith.constant dense<0.000000e+00> : vector<8x128xf32>
    %77 = tpu.matmul %74, %76, %cst_26 {dimension_numbers = #tpu.dot_dimension_numbers<[1], [0], [0], [1], [0, 0, 1, 1], [], []>} : vector<8x32xbf16>, vector<32x128xbf16>, vector<8x128xf32> -> vector<8x128xf32>
    %78 = vector.extract_strided_slice %5 {offsets = [1, 0], sizes = [1, 128], strides = [1, 1]} : vector<8x128xf32> to vector<1x128xf32>
    %79 = vector.broadcast %78 : vector<1x128xf32> to vector<8x128xf32>
    %80 = arith.addf %77, %79 : vector<8x128xf32>
    %cst_27 = arith.constant 5.000000e-01 : f32
    %81 = vector.broadcast %cst_27 : f32 to vector<8x128xf32>
    %82 = arith.mulf %81, %80 : vector<8x128xf32>
    %cst_28 = arith.constant 4.471500e-02 : f32
    %83 = vector.broadcast %cst_28 : f32 to vector<8x128xf32>
    %84 = arith.mulf %83, %80 : vector<8x128xf32>
    %85 = arith.mulf %84, %80 : vector<8x128xf32>
    %86 = arith.mulf %85, %80 : vector<8x128xf32>
    %87 = arith.addf %80, %86 : vector<8x128xf32>
    %cst_29 = arith.constant 0.797884583 : f32
    %88 = vector.broadcast %cst_29 : f32 to vector<8x128xf32>
    %89 = arith.mulf %88, %87 : vector<8x128xf32>
    %90 = math.tanh %89 : vector<8x128xf32>
    %cst_30 = arith.constant 1.000000e+00 : f32
    %91 = vector.broadcast %cst_30 : f32 to vector<8x128xf32>
    %92 = arith.addf %91, %90 : vector<8x128xf32>
    %93 = arith.mulf %82, %92 : vector<8x128xf32>
    %94 = arith.truncf %93 : vector<8x128xf32> to vector<8x128xbf16>
    %c0_31 = arith.constant 0 : index
    %c0_32 = arith.constant 0 : index
    %c0_33 = arith.constant 0 : index
    %95 = vector.load %arg7[%c0_31, %c0_32, %c0_33] : memref<1x128x32xbf16, #tpu.memory_space<vmem>>, vector<1x128x32xbf16>
    %96 = vector.shape_cast %95 : vector<1x128x32xbf16> to vector<128x32xbf16>
    %cst_34 = arith.constant dense<0.000000e+00> : vector<8x32xf32>
    %97 = tpu.matmul %94, %96, %cst_34 {dimension_numbers = #tpu.dot_dimension_numbers<[1], [0], [0], [1], [0, 0, 1, 1], [], []>} : vector<8x128xbf16>, vector<128x32xbf16>, vector<8x32xf32> -> vector<8x32xf32>
    %98 = vector.extract_strided_slice %5 {offsets = [5, 0], sizes = [1, 32], strides = [1, 1]} : vector<8x128xf32> to vector<1x32xf32>
    %99 = vector.broadcast %98 : vector<1x32xf32> to vector<8x32xf32>
    %100 = arith.addf %97, %99 : vector<8x32xf32>
    %101 = arith.addf %100, %73 : vector<8x32xf32>
    %102 = vector.extract_strided_slice %5 {offsets = [6, 0], sizes = [1, 32], strides = [1, 1]} : vector<8x128xf32> to vector<1x32xf32>
    %103 = vector.extract_strided_slice %5 {offsets = [7, 0], sizes = [1, 32], strides = [1, 1]} : vector<8x128xf32> to vector<1x32xf32>
    %cst_35 = arith.constant dense<0.000000e+00> : vector<8xf32>
    %104 = vector.multi_reduction <add>, %101, %cst_35 [1] : vector<8x32xf32> to vector<8xf32>
    %105 = vector.shape_cast %104 : vector<8xf32> to vector<8x1xf32>
    %cst_36 = arith.constant 3.200000e+01 : f32
    %106 = vector.broadcast %cst_36 : f32 to vector<8x1xf32>
    %107 = arith.divf %105, %106 : vector<8x1xf32>
    %108 = vector.broadcast %107 : vector<8x1xf32> to vector<8x32xf32>
    %109 = arith.subf %101, %108 : vector<8x32xf32>
    %110 = arith.mulf %109, %109 : vector<8x32xf32>
    %cst_37 = arith.constant dense<0.000000e+00> : vector<8xf32>
    %111 = vector.multi_reduction <add>, %110, %cst_37 [1] : vector<8x32xf32> to vector<8xf32>
    %112 = vector.shape_cast %111 : vector<8xf32> to vector<8x1xf32>
    %cst_38 = arith.constant 3.200000e+01 : f32
    %113 = vector.broadcast %cst_38 : f32 to vector<8x1xf32>
    %114 = arith.divf %112, %113 : vector<8x1xf32>
    %cst_39 = arith.constant 9.99999996E-13 : f32
    %115 = vector.broadcast %cst_39 : f32 to vector<8x1xf32>
    %116 = arith.addf %114, %115 : vector<8x1xf32>
    %117 = math.rsqrt %116 : vector<8x1xf32>
    %118 = vector.broadcast %117 : vector<8x1xf32> to vector<8x32xf32>
    %119 = arith.mulf %109, %118 : vector<8x32xf32>
    %120 = vector.broadcast %102 : vector<1x32xf32> to vector<8x32xf32>
    %121 = arith.mulf %119, %120 : vector<8x32xf32>
    %122 = vector.broadcast %103 : vector<1x32xf32> to vector<8x32xf32>
    %123 = arith.addf %121, %122 : vector<8x32xf32>
    %c0_40 = arith.constant 0 : index
    %c0_41 = arith.constant 0 : index
    %124 = vector.load %arg12[%c0_40, %c0_41] : memref<8x32xf32, #tpu.memory_space<vmem>>, vector<8x32xf32>
    tpu.vector_store %arg12[%c0_40, %c0_41], %123 {strides = array<i32>} : memref<8x32xf32, #tpu.memory_space<vmem>>, vector<8x32xf32>,
    %c1_i32 = arith.constant 1 : i32
    %125 = arith.cmpi eq, %arg1, %c1_i32 : i32
    %126 = arith.extui %125 : i1 to i32
    %c0_i32_42 = arith.constant 0 : i32
    %127 = arith.cmpi ne, %126, %c0_i32_42 : i32
    scf.if %127 {
      %128 = arith.truncf %123 : vector<8x32xf32> to vector<8x32xbf16>
      %c0_43 = arith.constant 0 : index
      %c0_44 = arith.constant 0 : index
      %129 = vector.load %arg9[%c0_43, %c0_44] : memref<32x128xbf16, #tpu.memory_space<vmem>>, vector<32x128xbf16>
      %cst_45 = arith.constant dense<0.000000e+00> : vector<8x128xf32>
      %130 = tpu.matmul %128, %129, %cst_45 {dimension_numbers = #tpu.dot_dimension_numbers<[1], [0], [0], [1], [0, 0, 1, 1], [], []>} : vector<8x32xbf16>, vector<32x128xbf16>, vector<8x128xf32> -> vector<8x128xf32>
      %c0_46 = arith.constant 0 : index
      %c0_47 = arith.constant 0 : index
      %131 = vector.load %arg10[%c0_46, %c0_47] : memref<1x128xf32, #tpu.memory_space<vmem>>, vector<1x128xf32>
      %132 = vector.broadcast %131 : vector<1x128xf32> to vector<8x128xf32>
      %133 = arith.addf %130, %132 : vector<8x128xf32>
      %c0_48 = arith.constant 0 : index
      %c0_49 = arith.constant 0 : index
      %134 = vector.load %arg11[%c0_48, %c0_49] : memref<8x128xf32, #tpu.memory_space<vmem>>, vector<8x128xf32>
      tpu.vector_store %arg11[%c0_48, %c0_49], %133 {strides = array<i32>} : memref<8x128xf32, #tpu.memory_space<vmem>>, vector<8x128xf32>,
    } else {
    }
    return
  }
  func.func @transform_0(%arg0: i32, %arg1: i32) -> (i32, i32) {
    %c0_i32 = arith.constant 0 : i32
    %c0_i32_0 = arith.constant 0 : i32
    return %arg0, %c0_i32 : i32, i32
  }
  func.func @transform_1(%arg0: i32, %arg1: i32) -> (i32, i32) {
    %c0_i32 = arith.constant 0 : i32
    %c0_i32_0 = arith.constant 0 : i32
    %c0_i32_1 = arith.constant 0 : i32
    return %c0_i32, %c0_i32_0 : i32, i32
  }
  func.func @transform_2(%arg0: i32, %arg1: i32) -> (i32, i32, i32) {
    %c0_i32 = arith.constant 0 : i32
    %c0_i32_0 = arith.constant 0 : i32
    %c0_i32_1 = arith.constant 0 : i32
    return %arg1, %c0_i32, %c0_i32_0 : i32, i32, i32
  }
  func.func @transform_3(%arg0: i32, %arg1: i32) -> (i32, i32, i32) {
    %c0_i32 = arith.constant 0 : i32
    %c0_i32_0 = arith.constant 0 : i32
    %c0_i32_1 = arith.constant 0 : i32
    return %arg1, %c0_i32, %c0_i32_0 : i32, i32, i32
  }
  func.func @transform_4(%arg0: i32, %arg1: i32) -> (i32, i32, i32) {
    %c0_i32 = arith.constant 0 : i32
    %c0_i32_0 = arith.constant 0 : i32
    %c0_i32_1 = arith.constant 0 : i32
    return %arg1, %c0_i32, %c0_i32_0 : i32, i32, i32
  }
  func.func @transform_5(%arg0: i32, %arg1: i32) -> (i32, i32, i32) {
    %c0_i32 = arith.constant 0 : i32
    %c0_i32_0 = arith.constant 0 : i32
    %c0_i32_1 = arith.constant 0 : i32
    return %arg1, %c0_i32, %c0_i32_0 : i32, i32, i32
  }
  func.func @transform_6(%arg0: i32, %arg1: i32) -> (i32, i32, i32) {
    %c0_i32 = arith.constant 0 : i32
    %c0_i32_0 = arith.constant 0 : i32
    %c0_i32_1 = arith.constant 0 : i32
    return %arg1, %c0_i32, %c0_i32_0 : i32, i32, i32
  }
  func.func @transform_7(%arg0: i32, %arg1: i32) -> (i32, i32) {
    %c0_i32 = arith.constant 0 : i32
    %c0_i32_0 = arith.constant 0 : i32
    %c0_i32_1 = arith.constant 0 : i32
    return %c0_i32, %c0_i32_0 : i32, i32
  }
  func.func @transform_8(%arg0: i32, %arg1: i32) -> (i32, i32) {
    %c0_i32 = arith.constant 0 : i32
    %c0_i32_0 = arith.constant 0 : i32
    %c0_i32_1 = arith.constant 0 : i32
    return %c0_i32, %c0_i32_0 : i32, i32
  }
  func.func @transform_9(%arg0: i32, %arg1: i32) -> (i32, i32) {
    %c0_i32 = arith.constant 0 : i32
    %c0_i32_0 = arith.constant 0 : i32
    return %arg0, %c0_i32 : i32, i32
  }
}

</mosaic_0001>

<bundles_post_ra>
// kernel: bert_decoder.1
= control target key start
LH: loop header
LB: loop body
LE: loop exit
PB: predicated region body
PF: predicated region fallthrough
CT: control target
= control target key end

     0   :  { %s1859_s0 = inlined_call_operand.vmem [shape: f32[16,32], index: 0, kind: input, shape index: {}]   ;;  %s1860_s1 = inlined_call_operand.vmem [shape: f32[32,32], index: 1, kind: input, shape index: {}]   ;;  %s1861_s2 = inlined_call_operand.vmem [shape: bf16[2,32,96], index: 2, kind: input, shape index: {}]   ;;  %s1862_s3 = inlined_call_operand.vmem [shape: bf16[2,32,32], index: 3, kind: input, shape index: {}]   ;;  %s1863_s4 = inlined_call_operand.vmem [shape: bf16[2,32,128], index: 4, kind: input, shape index: {}]   ;;  %s1864_s5 = inlined_call_operand.vmem [shape: bf16[2,128,32], index: 5, kind: input, shape index: {}]   ;;  %s1865_s6 = inlined_call_operand.vmem [shape: f32[2,8,128], index: 6, kind: input, shape index: {}]   ;;  %s1866_s7 = inlined_call_operand.hbm [shape: bf16[32,128], index: 7, kind: input, shape index: {}]   ;;  %s1867_s8 = inlined_call_operand.vmem [shape: f32[1,128], index: 8, kind: input, shape index: {}]   ;;  %s1868_s9 = inlined_call_operand.vmem [shape: f32[16,128], index: 9, kind: output, shape index: {}]  }
   0x1   :  { %1872 = sst [smem:[#allocation8_spill]] %s1859_s0 }
   0x2   :  { %1873 = sst [smem:[#allocation9_spill]] %s1861_s2 }
   0x3   :  { %1874 = sst [smem:[#allocation10_spill]] %s1866_s7 }
   0x4   :  { %14 = vsyncpa [#allocation4], 0  ;;  %s1630_s30 = smov 0   ;;  %s1632_s10 = smov 0  }
   0x5   :  { %s1634_s11 = smov 0   ;;  %s1636_s12 = smov 0  }
   0x6   :  { %s1638_s13 = smov 0  }
   0x7 LB: > { %s1240_s14 = sadd.s32 4294967295, %s1563_s13   ;;  %s29_s15 = sadd.s32 1, %s1555_s11  ;;  %s1563_s13 = sphi %s1638_s13, %s20_s13   ;;  %s1559_s12 = sphi %s1636_s12, %s1890_s12   ;;  %s1555_s11 = sphi %s1634_s11, %s1889_s11   ;;  %s1551_s10 = sphi %s1632_s10, %s1888_s10   ;;  %s1547_s30 = sphi %s1630_s30, %s1887_s30  }
   0x8   : > { %p30_p0 = scmp.ge.s32.totalorder %s29_s15, 2  ;;  %s32_s16 = sadd.s32 1, %s1559_s12 }
   0x9   : > { %p1242_p1 = scmp.ge.s32.totalorder %s1563_s13, 1  ;;  %p282_p2 = scmp.lt.s32.totalorder %s1563_s13, 5 }
   0xa   : > { %s1892_s15 = smov (%p30_p0, %s29_s15), 0  ;;  %s1894_s16 = smov (!%p30_p0, %s32_s16), %s1559_s12 }
   0xb   : > { %1875 = sst [smem:[#allocation6_spill]] %s1892_s15  ;;  %p1663_p3 = pnand %p1242_p1, %p282_p2 }
   0xc   : > { %p34_p4 = scmp.ge.s32.totalorder %s1894_s16, 2  ;;  %p1667_p5 = scmp.eq.s32.totalorder %s1240_s14, 0 }
   0xd   : > { %s1876_s17 = scalar_select %p1663_p3, 1, 0 }
   0xe   : > { %s1877_s18 = scalar_select %p1667_p5, 1, 0 }
   0xf   : > { %p1394_p6 = pneg %p1663_p3  ;;  %s1896_s16 = smov (%p34_p4, %s1894_s16), 0 }
  0x10   : > { %1878 = sst [smem:[#allocation7_spill]] %s1896_s16  ;;  %s1565_s19 = smov [#allocation3]  }
  0x11   : > { %s297_s20 = sshll.u32 %s1565_s19, 4  ;;  %p1677_p7 = pnand %p1667_p5, %p1394_p6  ;;  %s298_s20 = int_to_ptr.vmem [resolvable:$true] %s297_s20 }
  0x12   : > { %s1880_s7 = sld [smem:[#allocation10_spill]] }
  0x13   : > { %p1495_p9 = pneg %p1677_p7 }
  0x18   : > { %s1493_s24 = scalar_lea.hbm %s1880_s7, 256 }
  0x19   : > { %p1494_p8 = scmp.ne.s32.totalorder %s1880_s7, %s1493_s24  ;;  %p1500_p12 = scmp.lt.u32.totalorder %s1493_s24, %s1880_s7 }
  0x1b   : > { %p1496_p10 = pnand %p1495_p9, %p1494_p8 }
  0x1d   : > { %p1497_p11 = pneg %p1496_p10 }
  0x1f   : > { %p1502_p13 = pnand %p1500_p12, %p1497_p11 }
  0x21   : > { %1505 = shalt.err (!%p1502_p13)
}
  0x22   : > { %s1506_s29 = scalar_lea.vmem %s298_s20, 256  ;;  %p1514_p4 = scmp.lt.s32.totalorder %s298_s20, %s298_s20 }
  0x23   : > { %p1507_p0 = scmp.ne.s32.totalorder %s298_s20, %s1506_s29  ;;  %p1515_p6 = scmp.lt.s32.totalorder %s1506_s29, %s1506_s29 }
  0x25   : > { %p1509_p1 = pnand %p1507_p0, %p1495_p9  ;;  %p1516_p5 = por %p1515_p6, %p1514_p4 }
  0x27   : > { %p1510_p2 = pneg %p1509_p1 }
  0x29   : > { %p1517_p3 = pnand %p1516_p5, %p1510_p2 }
  0x2b   : > { %1520 = shalt.err (!%p1517_p3)
}
  0x2c   : > { %s1566_s14 = smov 64   ;;  %s1567_s19 = smov 4  }
  0x2d   : > { %1397 = dma.hbm_to_vmem [thread:$0]  (!%p1677_p7), %s1880_s7, 256, %s298_s20, [#allocation4], %s1566_s14, %s1566_s14, %s1567_s19  }
  0x2e   : > { %p1881_p8 = scmp.ne.s32.totalorder %s1876_s17, 0 }
  0x2f   : > { %p1882_p10 = scmp.ne.s32.totalorder (!%p1881_p8), %s1877_s18, 0 }
  0x30   : > { %362 = sbr.rel (%p1881_p8) target bundleno = 2935 (0xb77), region = 56 }
  0x37   : > { %1542 = dma.done.wait (%p1882_p10), [#allocation4], 256  }
  0x38   : > { %1544 = vsyncadd (%p1882_p10), [#allocation4], 4294967040  ;;  %p420_p3 = scmp.lt.s32.totalorder %s1551_s10, 1  ;;  %p424_p5 = scmp.lt.s32.totalorder %s1547_s30, 1 }
  0x39   : > { %s1883_s0 = sld [smem:[#allocation8_spill]]  ;;  %s1884_s2 = sld [smem:[#allocation9_spill]] }
  0x3a   : > { %s1898_s10 = smov (!%p420_p3, %s1551_s10), 1  ;;  %p1258_p7 = scmp.ne.s32.totalorder %s1547_s30, 0 }
  0x3b   : > { %s425_s21 = scalar_select %p424_p5, %s1547_s30, 1 }
  0x3c   : > { %s1247_s24 = sshll.u32 %s1898_s10, 3  ;;  %456 = sbr.rel (%p1258_p7) target bundleno = 67 (0x43), region = 64  ;;  %vm458_vm0 = vcmask (!%p1258_p7), 261120  }
  0x3d   : > { %s1287_s26 = sshll.u32 %s425_s21, 4  ;;  %s1290_s10 = sshll.u32 %s425_s21, 6 }
  0x3e   : > { %s1716_s19 = scalar_lea.vmem %s1862_s3, %s1287_s26  ;;  %s1721_s7 = scalar_lea.vmem %s1863_s4, %s1287_s26 }
  0x3f   : > { %s423_s17 = scalar_lea.vmem %s1883_s0, %s1247_s24  ;;  %s428_s29 = scalar_lea.vmem %s1884_s2, %s1287_s26 }
  0x40   : > { %s1726_s25 = scalar_lea.vmem %s1864_s5, %s1290_s10  ;;  %s1256_s20 = sshll.u32 %s425_s21, 3  ;;  %v457_v0 = vld [vmem:[%s423_s17] sm:$0xff] (!%p1258_p7) }
  0x41   : > { %s447_s28 = scalar_lea.vmem %s1865_s6, %s1256_s20  ;;  %s1734_s14 = scalar_lea.vmem %s1868_s9, %s1247_s24  ;;  %459 = vst.msk [vmem:[#allocation2] sm:$0xff] (!%p1258_p7), %vm458_vm0, %v457_v0 }
  0x43 PF: > { %v1455_v1 = vld [vmem:[%s428_s29] sm:$0xff]   ;;  %v1568_v2 = vmov 0.0   ;;  %v1456_v3 = vld [vmem:[%s428_s29 + $0x8] sm:$0xff]   ;;  %vm1569_vm1 = vmmov 0   ;;  %vm483_vm2 = vcmask 261120   ;;  %v467_v6 = vlaneseq  ;;  %s1570_s0 = smov 56  }
  0x44   : > { %1320 = vmatprep.subr.bf16.mxu1 %v1568_v2  ;;  %1344 = vmatprep.subr.bf16.mxu0 %v1568_v2  ;;  %v1752_v9 = vld [vmem:[%s447_s28] sm:$0xff]  ;;  %s1571_s2 = smov 104   ;;  %s1572_s15 = smov 80   ;;  %vm549_vm3 = vcmask 64512   ;;  %v542_v28 = vld [vmem:[%s1860_s1 + $0x18] sm:$0xff]  ;;  %v540_v29 = vld [vmem:[%s1860_s1 + $0x8] sm:$0xff] }
  0x45   : > { %1321 = vmatpush3.bf16.msra.mxu1 %v1455_v1  ;;  %1324 = vmatprep.mubr.msk.bf16.mxu1 %vm1569_vm1, %v1568_v2  ;;  %v1749_v7 = vshrl.u32 %v467_v6, 7  ;;  %s1573_s16 = smov 120   ;;  %v539_v25 = vld [vmem:[%s1860_s1] sm:$0xff]  ;;  %v541_v32 = vld [vmem:[%s1860_s1 + $0x10] sm:$0xff]  ;;  %s1574_s20 = smov 112   ;;  %vm731_vm4 = vcmask 130048  }
  0x46   : > { %1322 = vmatprep.subr.bf16.mxu1 %v1568_v2  ;;  %1348 = vmatprep.mubr.msk.bf16.mxu0 %vm1569_vm1, %v1568_v2  ;;  %s1575_s27 = smov 16   ;;  %s1576_s28 = smov 8   ;;  %vm733_vm5 = vcmask 195584  }
  0x47   : > { %v469_v8 = vsub.s32 0, %v1749_v7  ;;  %s1577_s18 = smov 24   ;;  %p1280_p9 = scmp.ne.s32.totalorder %s1547_s30, 1 }
  0x48   : > { %v1741_v4 = vld [vmem:[#allocation2] sm:$0xff]  ;;  %vm1579_vm6 = vmmov (!%p1280_p9), 0  }
  0x49   : > { %v462_v5 = vpack.c.bf16 %v1741_v4, %v1741_v4  ;;  %1323 = vmatpush3.bf16.msra.mxu1 %v1456_v3  ;;  %v470_v10 = vrot.slane %v1752_v9, %v469_v8 }
  0x4c   : > { %1325 = vmatmul.mubr.msk.bf16.vlgmr.msra.gmra.mrb[0].mxu1 %vm483_vm2, %v462_v5 }
 0x11f   : > { %v521_v11 = vpop.f32.mrb[0].mxu1 }
 0x120   : > { %v522_v12 = vadd.f32 %v521_v11, %v470_v10  ;;  %v1326_v13 = vpop.f32.mrb[1].mxu1 }
 0x121   : > { %v524_v14 = vpop.f32.mrb[2].mxu1 }
 0x122   : > { %534 = vrot.lane.b32.xlu1 %v522_v12, %s1570_s0  ;;  %528 = vrot.lane.b32.xlu0 %v522_v12, %s1571_s2  ;;  %v1327_v15 = vpop.f32.mrb[3].mxu1 }
 0x126   : > { %531 = vrot.lane.b32.xlu0 %v522_v12, %s1572_s15 }
 0x194   : > { %v529_v16 = vpop.permute.xlu0 %528  ;;  %v535_v18 = vpop.permute.xlu1 %534 }
 0x195   : > { %v1755_v17 = vpack.c.bf16 %v529_v16, %v522_v12 }
 0x197   : > { %545 = vrot.lane.b32.xlu1 %v1755_v17, %s1573_s16  ;;  %1332 = vmatprep.mubr.msk.bf16.mxu1 %vm549_vm3, %v1755_v17 }
 0x198   : > { %v532_v19 = vpop.permute.xlu0 %531 }
 0x199   : > { %v538_v20 = vpack.c.bf16 %v535_v18, %v532_v19  ;;  %v1458_v18 = vld [vmem:[%s1716_s19 + $0x8] sm:$0xff]  }
 0x19b   : > { %547 = vrot.lane.b32.xlu0 %v538_v20, %s1573_s16 }
 0x209   : > { %v546_v21 = vpop.permute.xlu1 %545 }
 0x20a   : > { %v557_v22 = vsel %vm549_vm3, %v546_v21, 0  ;;  %1388 = vmatprep.subr.msk.bf16.mxu1 %vm549_vm3, %v546_v21 }
 0x20b   : > { %1329 = vmatpush3.bf16.xpose.msra.mxu1 %v557_v22 }
 0x20d   : > { %v548_v23 = vpop.permute.xlu0 %547 }
 0x20e   : > { %1389 = vmatprep.subr.msk.bf16.mxu1 %vm549_vm3, %v548_v23  ;;  %v560_v24 = vsel %vm549_vm3, %v548_v23, 0 }
 0x213   : > { %1331 = vmatpush3.bf16.xpose.msra.mxu1 %v560_v24 }
 0x21a   : > { %1333 = vmatmul.mubr.msk.bf16.vlgmr.msra.gmra.mrb[4].mxu1 %vm549_vm3, %v538_v20 }
 0x2ed   : > { %v1334_v26 = vpop.f32.mrb[4].mxu1 }
 0x2ee   : > { %v596_v27 = vpop.f32.mrb[5].mxu1  ;;  %v605_v37 = vadd.f32 %v1334_v26, %v541_v32 }
 0x2ef   : > { %v597_v30 = vadd.f32 %v596_v27, %v539_v25  ;;  %v1335_v31 = vpop.f32.mrb[6].mxu1 }
 0x2f0   : > { %v599_v33 = vpop.f32.mrb[7].mxu1  ;;  %v608_v34 = vadd.f32 %v1335_v31, %v542_v28  ;;  %v617_v40 = vsel %vm483_vm2, %v605_v37, -inf }
 0x2f1   : > { %v600_v35 = vadd.f32 %v599_v33, %v540_v29  ;;  %v611_v36 = vsel %vm483_vm2, %v597_v30, -inf }
 0x2f2   : > { %612 = vmax.xlane.f32.xlu1 %v611_v36  ;;  %v620_v39 = vsel %vm483_vm2, %v608_v34, -inf }
 0x2f3   : > { %v614_v38 = vsel %vm483_vm2, %v600_v35, -inf }
 0x2f4   : > { %615 = vmax.xlane.f32.xlu0 %v614_v38 }
 0x2f6   : > { %621 = vmax.xlane.f32.xlu1 %v620_v39 }
 0x2f8   : > { %618 = vmax.xlane.f32.xlu0 %v617_v40 }
 0x37f   : > { %v613_v41 = vpop.xlane.xlu1 %612 }
 0x380   : > { %v623_v45 = vsub.f32 %v597_v30, %v613_v41  ;;  %v742_v30 = vsub.s32 2, %v1749_v7 }
 0x381   : > { %v616_v42 = vpop.xlane.xlu0 %615 }
 0x382   : > { %v624_v43 = vsub.f32 %v600_v35, %v616_v42  ;;  %v627_v51 = vmul.f32 1.442695, %v623_v45  ;;  %v743_v31 = vrot.slane %v1752_v9, %v742_v30  ;;  %v1460_v45 = vld [vmem:[%s1721_s7 + $0x8] sm:$0xff]  }
 0x383   : > { %v622_v44 = vpop.xlane.xlu1 %621 }
 0x384   : > { %v626_v46 = vsub.f32 %v608_v34, %v622_v44  ;;  %v629_v47 = vmul.f32 1.442695, %v624_v43  ;;  %v1459_v44 = vld [vmem:[%s1721_s7] sm:$0xff]  }
 0x385   : > { %v619_v48 = vpop.xlane.xlu0 %618 }
 0x386   : > { %v633_v49 = vmul.f32 1.442695, %v626_v46  ;;  %v625_v50 = vsub.f32 %v605_v37, %v619_v48  ;;  %v1461_v46 = vld [vmem:[%s1726_s25] sm:$0xff]  }
 0x388   : > { %1469 = vpow2.f32 %v633_v49  ;;  %v631_v52 = vmul.f32 1.442695, %v625_v50  ;;  %v816_v49 = vsub.s32 3, %v1749_v7  ;;  %v821_v50 = vsub.s32 4, %v1749_v7 }
 0x389   : > { %1471 = vpow2.f32 %v629_v47 }
 0x38a   : > { %1473 = vpow2.f32 %v631_v52 }
 0x38b   : > { %1475 = vpow2.f32 %v627_v51  ;;  %v817_v51 = vrot.slane %v1752_v9, %v816_v49 }
 0x392   : > { %v1470_v53 = vpop.eup %1469 }
 0x393   : > { %v1472_v54 = vpop.eup %1471  ;;  %v644_v55 = vsel %vm483_vm2, %v1470_v53, 0.0 }
 0x394   : > { %v1474_v56 = vpop.eup %1473  ;;  %645 = vadd.xlane.f32.xlu1 %v644_v55  ;;  %v638_v59 = vsel %vm483_vm2, %v1472_v54, 0.0 }
 0x395   : > { %v641_v57 = vsel %vm483_vm2, %v1474_v56, 0.0  ;;  %v1476_v58 = vpop.eup %1475 }
 0x396   : > { %642 = vadd.xlane.f32.xlu0 %v641_v57  ;;  %v635_v60 = vsel %vm483_vm2, %v1476_v58, 0.0 }
 0x398   : > { %639 = vadd.xlane.f32.xlu1 %v638_v59  ;;  %v1463_v59 = vld [vmem:[%s1726_s25 + $0x10] sm:$0xff]  }
 0x39a   : > { %636 = vadd.xlane.f32.xlu0 %v635_v60  ;;  %v1464_v60 = vld [vmem:[%s1726_s25 + $0x18] sm:$0xff]  }
 0x3a9   : > { %659 = vrot.lane.b32.xlu1 %v538_v20, %s1574_s20 }
 0x3b0   : > { %657 = vrot.lane.b32.xlu0 %v1755_v17, %s1574_s20  ;;  %v1457_v17 = vld [vmem:[%s1716_s19] sm:$0xff]  }
 0x3b1   : > { %1345 = vmatpush3.bf16.msra.mxu0 %v1457_v17 }
 0x3b2   : > { %1346 = vmatprep.subr.bf16.mxu0 %v1568_v2 }
 0x3b5   : > { %1347 = vmatpush3.bf16.msra.mxu0 %v1458_v18 }
 0x3b6   : > { %1360 = vmatprep.subr.bf16.mxu0 %v1568_v2 }
 0x421   : > { %v646_v61 = vpop.xlane.xlu1 %645 }
 0x423   : > { %v643_v62 = vpop.xlane.xlu0 %642 }
 0x424   : > { %1477 = vrcp.f32 %v643_v62  ;;  %v1466_v62 = vld [vmem:[%s1726_s25 + $0x28] sm:$0xff]  }
 0x425   : > { %v640_v63 = vpop.xlane.xlu1 %639 }
 0x426   : > { %1479 = vrcp.f32 %v640_v63  ;;  %v1467_v63 = vld [vmem:[%s1726_s25 + $0x30] sm:$0xff]  }
 0x427   : > { %1481 = vrcp.f32 %v646_v61  ;;  %v637_v0 = vpop.xlane.xlu0 %636  ;;  %v1465_v61 = vld [vmem:[%s1726_s25 + $0x20] sm:$0xff]  }
 0x428   : > { %1483 = vrcp.f32 %v637_v0  ;;  %v1468_v0 = vld [vmem:[%s1726_s25 + $0x38] sm:$0xff]  }
 0x429   : > { %v660_v3 = vpop.permute.xlu1 %659 }
 0x42b   : > { %v658_v1 = vpop.permute.xlu0 %657 }
 0x42c   : > { %1336 = vmatprep.subr.bf16.mxu1 %v658_v1 }
 0x42d   : > { %1337 = vmatpush3.bf16.msra.mxu1 %v658_v1  ;;  %v831_v1 = vsub.s32 1, %v1749_v7 }
 0x42e   : > { %1338 = vmatprep.subr.bf16.mxu1 %v660_v3  ;;  %v1478_v5 = vpop.eup %1477 }
 0x42f   : > { %v653_v11 = vmul.f32 %v1478_v5, %v1474_v56 }
 0x430   : > { %v1480_v6 = vpop.eup %1479 }
 0x431   : > { %v1482_v8 = vpop.eup %1481  ;;  %1339 = vmatpush3.bf16.msra.mxu1 %v660_v3  ;;  %v652_v13 = vmul.f32 %v1480_v6, %v1472_v54  ;;  %v822_v54 = vrot.slane %v1752_v9, %v821_v50  ;;  %v832_v3 = vrot.slane %v1752_v9, %v831_v1 }
 0x432   : > { %v1484_v10 = vpop.eup %1483  ;;  %1352 = vmatprep.subr.bf16.mxu1 %v1568_v2  ;;  %v654_v14 = vmul.f32 %v1482_v8, %v1470_v53 }
 0x433   : > { %v651_v12 = vmul.f32 %v1484_v10, %v1476_v58  ;;  %v1462_v58 = vld [vmem:[%s1726_s25 + $0x8] sm:$0xff]  }
 0x434   : > { %v656_v16 = vpack.c.bf16 %v654_v14, %v653_v11 }
 0x435   : > { %v655_v15 = vpack.c.bf16 %v652_v13, %v651_v12 }
 0x437   : > { %1340 = vmatprep.mubr.msk.bf16.mxu1 %vm483_vm2, %v655_v15 }
 0x438   : > { %1341 = vmatmul.mubr.msk.bf16.vlgmr.msra.gmra.mrb[8].mxu1 %vm483_vm2, %v656_v16 }
 0x439   : > { %1356 = vmatprep.mubr.msk.bf16.mxu1 %vm1569_vm1, %v1568_v2  ;;  %1353 = vmatpush3.bf16.msra.mxu1 %v1459_v44 }
 0x43a   : > { %1354 = vmatprep.subr.bf16.mxu1 %v1568_v2 }
 0x43d   : > { %1355 = vmatpush3.bf16.msra.mxu1 %v1460_v45 }
 0x50b   : > { %v1342_v19 = vpop.f32.mrb[8].mxu1 }
 0x50c   : > { %723 = vrot.lane.b32.xlu0 %v1342_v19, %s1575_s27  ;;  %v703_v20 = vpop.f32.mrb[9].mxu1 }
 0x50d   : > { %v1343_v21 = vpop.f32.mrb[10].mxu1 }
 0x50e   : > { %v706_v22 = vpop.f32.mrb[11].mxu1 }
 0x50f   : > { %719 = vrot.lane.b32.xlu1 %v706_v22, %s1576_s28 }
 0x513   : > { %727 = vrot.lane.b32.xlu1 %v1343_v21, %s1577_s18  ;;  %v916_v21 = vsub.s32 5, %v1749_v7 }
 0x515   : > { %v917_v22 = vrot.slane %v1752_v9, %v916_v21 }
 0x57e   : > { %v724_v25 = vpop.permute.xlu0 %723 }
 0x581   : > { %v720_v23 = vpop.permute.xlu1 %719 }
 0x582   : > { %v730_v24 = vsel %vm549_vm3, %v703_v20, %v720_v23 }
 0x583   : > { %v732_v26 = vsel %vm731_vm4, %v730_v24, %v724_v25 }
 0x585   : > { %v728_v27 = vpop.permute.xlu1 %727 }
 0x586   : > { %v734_v28 = vsel %vm733_vm5, %v732_v26, %v728_v27 }
 0x587   : > { %v735_v29 = vpack.c.bf16 %v734_v28, %v734_v28 }
 0x589   : > { %1349 = vmatmul.mubr.msk.bf16.vlgmr.msra.gmra.mrb[0].mxu0 %vm483_vm2, %v735_v29 }
 0x58a   : > { %1376 = vmatprep.mubr.msk.bf16.mxu0 %vm1569_vm1, %v1568_v2  ;;  %1361 = vmatpush3.bf16.msra.mxu0 %v1461_v46  ;;  %v1491_v46 = vld [vmem:[#allocation3] sm:$0xff] (!%p1280_p9)  }
 0x58b   : > { %1362 = vmatprep.subr.bf16.mxu0 %v1568_v2 }
 0x58e   : > { %1363 = vmatpush3.bf16.msra.mxu0 %v1462_v58 }
 0x58f   : > { %1364 = vmatprep.subr.bf16.mxu0 %v1568_v2 }
 0x592   : > { %1365 = vmatpush3.bf16.msra.mxu0 %v1463_v59 }
 0x593   : > { %1366 = vmatprep.subr.bf16.mxu0 %v1568_v2 }
 0x596   : > { %1367 = vmatpush3.bf16.msra.mxu0 %v1464_v60 }
 0x597   : > { %1368 = vmatprep.subr.bf16.mxu0 %v1568_v2 }
 0x59a   : > { %1369 = vmatpush3.bf16.msra.mxu0 %v1465_v61 }
 0x59b   : > { %1370 = vmatprep.subr.bf16.mxu0 %v1568_v2 }
 0x59e   : > { %1371 = vmatpush3.bf16.msra.mxu0 %v1466_v62 }
 0x59f   : > { %1372 = vmatprep.subr.bf16.mxu0 %v1568_v2 }
 0x5a2   : > { %1373 = vmatpush3.bf16.msra.mxu0 %v1467_v63 }
 0x5a3   : > { %1374 = vmatprep.subr.bf16.mxu0 %v1568_v2 }
 0x5a6   : > { %1375 = vmatpush3.bf16.msra.mxu0 %v1468_v0 }
 0x65c   : > { %v793_v32 = vpop.f32.mrb[0].mxu0 }
 0x65d   : > { %v794_v33 = vadd.f32 %v793_v32, %v743_v31  ;;  %v1350_v34 = vpop.f32.mrb[1].mxu0 }
 0x65e   : > { %v796_v35 = vpop.f32.mrb[2].mxu0 }
 0x65f   : > { %v1351_v36 = vpop.f32.mrb[3].mxu0  ;;  %v799_v37 = vadd.f32 %v794_v33, %v1741_v4 }
 0x661   : > { %v800_v38 = vsel %vm483_vm2, %v799_v37, 0.0 }
 0x662   : > { %801 = vadd.xlane.f32.xlu0 %v800_v38  ;;  %v1022_v38 = vsub.s32 6, %v1749_v7 }
 0x6ef   : > { %v802_v39 = vpop.xlane.xlu0 %801 }
 0x6f0   : > { %v804_v40 = vmul.f32 0.03125, %v802_v39  ;;  %v1027_v39 = vsub.s32 7, %v1749_v7 }
 0x6f2   : > { %v805_v41 = vsub.f32 %v799_v37, %v804_v40  ;;  %v1023_v40 = vrot.slane %v1752_v9, %v1022_v38 }
 0x6f4   : > { %v806_v42 = vmul.f32 %v805_v41, %v805_v41 }
 0x6f6   : > { %v807_v43 = vsel %vm483_vm2, %v806_v42, 0.0  ;;  %v1028_v42 = vrot.slane %v1752_v9, %v1027_v39  ;;  %v1281_v9 = vld [vmem:[%s1867_s8] ss:$0 sm:$0xff] (!%p1280_p9) }
 0x6f7   : > { %808 = vadd.xlane.f32.xlu1 %v807_v43 }
 0x784   : > { %v809_v4 = vpop.xlane.xlu1 %808 }
 0x785   : > { %v810_v47 = vmul.f32 0.03125, %v809_v4  ;;  %v1578_v4 = vmov (!%p1280_p9), 0.0  }
 0x786   : > { %1380 = vmatprep.subr.bf16.mxu0 (!%p1280_p9), %v1578_v4 }
 0x787   : > { %v811_v48 = vadd.f32 1e-12, %v810_v47  ;;  %v1492_v47 = vld [vmem:[#allocation3 + $0x8] sm:$0xff] (!%p1280_p9)  }
 0x789   : > { %1485 = vrsqrt.f32 %v811_v48 }
 0x793   : > { %v1486_v52 = vpop.eup %1485 }
 0x794   : > { %v813_v53 = vmul.f32 %v1486_v52, %v805_v41 }
 0x796   : > { %v818_v55 = vmul.f32 %v817_v51, %v813_v53 }
 0x798   : > { %v823_v56 = vadd.f32 %v822_v54, %v818_v55 }
 0x79a   : > { %v824_v57 = vpack.c.bf16 %v823_v56, %v823_v56 }
 0x79c   : > { %1357 = vmatmul.mubr.msk.bf16.vlgmr.msra.gmra.mrb[12].mxu1 %vm483_vm2, %v824_v57 }
 0x86f   : > { %v882_v5 = vpop.f32.mrb[12].mxu1 }
 0x870   : > { %v883_v6 = vadd.f32 %v882_v5, %v832_v3  ;;  %v1358_v8 = vpop.f32.mrb[13].mxu1 }
 0x871   : > { %v885_v10 = vpop.f32.mrb[14].mxu1 }
 0x872   : > { %v889_v11 = vmul.f32 0.044715, %v883_v6  ;;  %v1359_v12 = vpop.f32.mrb[15].mxu1  ;;  %v888_v18 = vmul.f32 0.5, %v883_v6 }
 0x874   : > { %v890_v13 = vmul.f32 %v889_v11, %v883_v6 }
 0x876   : > { %v891_v14 = vmul.f32 %v890_v13, %v883_v6 }
 0x878   : > { %v892_v15 = vadd.f32 %v891_v14, %v883_v6 }
 0x87a   : > { %v893_v16 = vmul.f32 0.7978846, %v892_v15 }
 0x87c   : > { %1487 = vtanh.f32 %v893_v16 }
 0x886   : > { %v1488_v17 = vpop.eup %1487 }
 0x887   : > { %v895_v19 = vadd.f32 1.0, %v1488_v17 }
 0x889   : > { %v896_v2 = vmul.f32 %v895_v19, %v888_v18 }
 0x88b   : > { %v897_v20 = vpack.c.bf16 %v896_v2, %v896_v2 }
 0x88d   : > { %1377 = vmatmul.mubr.bf16.vlgmr.msra.gmra.mrb[4].mxu0 %v897_v20 }
 0x88e   : > { %1381 = vmatpush3.bf16.msra.mxu0 (!%p1280_p9), %v1491_v46  ;;  %1384 = vmatprep.mubr.msk.bf16.mxu0 (!%p1280_p9), %vm1579_vm6, %v1578_v4 }
 0x88f   : > { %1382 = vmatprep.subr.bf16.mxu0 (!%p1280_p9), %v1578_v4 }
 0x892   : > { %1383 = vmatpush3.bf16.msra.mxu0 (!%p1280_p9), %v1492_v47 }
 0x960   : > { %v1000_v23 = vpop.f32.mrb[4].mxu0 }
 0x961   : > { %v1001_v24 = vadd.f32 %v1000_v23, %v917_v22  ;;  %v1378_v25 = vpop.f32.mrb[5].mxu0 }
 0x962   : > { %v1003_v26 = vpop.f32.mrb[6].mxu0 }
 0x963   : > { %v1379_v27 = vpop.f32.mrb[7].mxu0  ;;  %v1006_v28 = vadd.f32 %v1001_v24, %v823_v56 }
 0x965   : > { %v1007_v29 = vsel %vm483_vm2, %v1006_v28, 0.0 }
 0x966   : > { %1008 = vadd.xlane.f32.xlu0 %v1007_v29 }
 0x9f3   : > { %v1009_v30 = vpop.xlane.xlu0 %1008 }
 0x9f4   : > { %v1010_v31 = vmul.f32 0.03125, %v1009_v30 }
 0x9f6   : > { %v1011_v32 = vsub.f32 %v1006_v28, %v1010_v31 }
 0x9f8   : > { %v1012_v33 = vmul.f32 %v1011_v32, %v1011_v32 }
 0x9fa   : > { %v1013_v34 = vsel %vm483_vm2, %v1012_v33, 0.0 }
 0x9fb   : > { %1014 = vadd.xlane.f32.xlu0 %v1013_v34 }
 0xa88   : > { %v1015_v35 = vpop.xlane.xlu0 %1014 }
 0xa89   : > { %v1016_v36 = vmul.f32 0.03125, %v1015_v35 }
 0xa8b   : > { %v1017_v37 = vadd.f32 1e-12, %v1016_v36 }
 0xa8d   : > { %1489 = vrsqrt.f32 %v1017_v37 }
 0xa97   : > { %v1490_v41 = vpop.eup %1489 }
 0xa98   : > { %v1019_v43 = vmul.f32 %v1490_v41, %v1011_v32  ;;  %1034 = sbr.rel (%p1280_p9) target bundleno = 2935 (0xb77), region = 68 }
 0xa9a   : > { %v1024_v44 = vmul.f32 %v1023_v40, %v1019_v43 }
 0xa9c   : > { %v1029_v45 = vadd.f32 %v1028_v42, %v1024_v44 }
 0xa9e   : > { %1030 = vst.msk [vmem:[#allocation2] sm:$0xff] %vm483_vm2, %v1029_v45  ;;  %v1035_v7 = vpack.c.bf16 (!%p1280_p9), %v1029_v45, %v1029_v45 }
 0xaa0   : > { %1385 = vmatmul.mubr.msk.bf16.vlgmr.msra.gmra.mrb[0].mxu0 %vm483_vm2, %v1035_v7 }
 0xb73   : > { %v1096_v48 = vpop.f32.mrb[0].mxu0 }
 0xb74   : > { %v1097_v49 = vadd.f32 %v1281_v9, %v1096_v48  ;;  %v1386_v50 = vpop.f32.mrb[1].mxu0 }
 0xb75   : > { %v1099_v51 = vpop.f32.mrb[2].mxu0 }
 0xb76   : > { %1102 = vst [vmem:[%s1734_s14] sm:$0xff] %v1097_v49  ;;  %v1387_v52 = vpop.f32.mrb[3].mxu0 }
 0xb77 PF: > { %s20_s13 = sadd.s32 1, %s1563_s13   ;;  %s1885_s25 = sld [smem:[#allocation6_spill]] }
 0xb78   : > { %p17_p11 = scmp.ge.s32.totalorder %s20_s13, 6   ;;  %s1886_s0 = sld [smem:[#allocation7_spill]] }
 0xb79   : > { %s1887_s30 = smov %s1555_s11  ;;  %s1888_s10 = smov %s1559_s12 }
 0xb7a   :  { %19 = sbr.rel (!%p17_p11) target bundleno = 7 (0x7), region = 114 }
 0xb7d   : > { %s1889_s11 = smov %s1885_s25 }
 0xb7e   : > { %s1890_s12 = smov %s1886_s0 }
 0xb81   :  { %1122 = vsyncpa [#allocation4], 1 }
 0xb82   :  { %1124 = vsyncpa [#allocation4 + $0x1], 1 }

</bundles_post_ra>
